<compile_context>
chip_gen: v6e
topology: v6e:2x2x1
jax: 0.10.0
libtpu: 0.0.40
codegen_flags: <defaults>
</compile_context>

<pallas_src>
import jax
import jax.numpy as jnp
from jax.experimental import pallas as pl
from jax.experimental.pallas import tpu as pltpu

# ---------------- configuration (matches the PyTorch module hyperparams) ----
INPUT_SIZE = 5            # len(feature_columns)
HIDDEN_LAYERS = [32, 32, 32]
OUTPUT_SIZE = 1
ACTIVATION = "relu"       # activation_fn = nn.ReLU


def _act(h):
    if ACTIVATION == "relu":
        return jnp.maximum(h, 0.0)
    raise ValueError(ACTIVATION)


def _round_up(n, m):
    return ((n + m - 1) // m) * m


# ---------------- Pallas kernel ---------------------------------------------
def mlp_kernel(x_ref,                       # [INPUT_SIZE, TB]   (feature-major)
               w1_ref, b1_ref,              # [H0, IN], [H0, 1]
               w2_ref, b2_ref,              # [H1, H0], [H1, 1]
               w3_ref, b3_ref,              # [H2, H1], [H2, 1]
               w4_ref, b4_ref,              # [1,  H2], [1,  1]
               o_ref):                      # [1, TB]
    # Layer 1: Linear(5 -> H0) + ReLU        h: [H0, TB]
    h = jnp.dot(w1_ref[...], x_ref[...], preferred_element_type=jnp.float32)
    h = _act(h + b1_ref[...])
    # Layer 2: Linear(H0 -> H1) + ReLU (+ Dropout, identity at inference)
    h = jnp.dot(w2_ref[...], h, preferred_element_type=jnp.float32)
    h = _act(h + b2_ref[...])
    # Layer 3: Linear(H1 -> H2) + ReLU (+ Dropout, identity at inference)
    h = jnp.dot(w3_ref[...], h, preferred_element_type=jnp.float32)
    h = _act(h + b3_ref[...])
    # Output layer: Linear(H2 -> 1), no activation    o: [1, TB] lane-dense
    o = jnp.dot(w4_ref[...], h, preferred_element_type=jnp.float32)
    o_ref[...] = (o + b4_ref[...]).astype(o_ref.dtype)


def simple_nn_forward(x, params, tb=4096):
    """x: [B, INPUT_SIZE] f32.
       params: list of (W [out, in], b [out, 1]) per layer (PyTorch layout)."""
    (w1, b1), (w2, b2), (w3, b3), (w4, b4) = params
    B = x.shape[0]

    # Batch tile on the lane axis: multiple of 128, capped by the padded batch.
    TB = min(tb, _round_up(B, 128))
    B_pad = _round_up(B, TB)

    # Feature-major layout: [INPUT_SIZE, B_pad]; padded columns are zeros and
    # are sliced off after the call.
    x_t = jnp.transpose(x)
    if B_pad != B:
        x_t = jnp.pad(x_t, ((0, 0), (0, B_pad - B)))

    resident = lambda a: pl.BlockSpec(a.shape, lambda i: (0, 0))

    out_t = pl.pallas_call(
        mlp_kernel,
        out_shape=jax.ShapeDtypeStruct((OUTPUT_SIZE, B_pad), jnp.float32),
        grid=(B_pad // TB,),
        in_specs=[
            pl.BlockSpec((INPUT_SIZE, TB), lambda i: (0, i)),   # x tile
            resident(w1), resident(b1),
            resident(w2), resident(b2),
            resident(w3), resident(b3),
            resident(w4), resident(b4),
        ],
        out_specs=pl.BlockSpec((OUTPUT_SIZE, TB), lambda i: (0, i)),
        compiler_params=pltpu.CompilerParams(
            dimension_semantics=("parallel",)),
    )(x_t, w1, b1, w2, b2, w3, b3, w4, b4)

    # Back to [B, OUTPUT_SIZE] (wrapper-side layout plumbing only).
    return jnp.transpose(out_t[:, :B])


# ---------------- deterministic parameter init (PyTorch-style uniform) ------
def init_params(key):
    dims = [INPUT_SIZE] + HIDDEN_LAYERS + [OUTPUT_SIZE]
    params = []
    for i in range(len(dims) - 1):
        fan_in, fan_out = dims[i], dims[i + 1]
        key, kw, kb = jax.random.split(key, 3)
        bound = 1.0 / (fan_in ** 0.5)
        # PyTorch layout: W [out, in], b stored [out, 1] for lane-broadcast.
        w = jax.random.uniform(kw, (fan_out, fan_in), jnp.float32, -bound, bound)
        b = jax.random.uniform(kb, (fan_out, 1), jnp.float32, -bound, bound)
        params.append((w, b))
    return params


def reference_forward(x, params):
    h = x
    for i, (w, b) in enumerate(params):
        h = h @ w.T + b.T
        if i < len(params) - 1:
            h = _act(h)
    return h


if __name__ == "__main__":
    key = jax.random.PRNGKey(0)
    key, kx = jax.random.split(key)

    B = 8
    x = jax.random.normal(kx, (B, INPUT_SIZE), jnp.float32)
    params = init_params(key)

    out = simple_nn_forward(x, params)
    out = jax.block_until_ready(out)

    ref = reference_forward(x, params)
    assert out.shape == (B, OUTPUT_SIZE)
    assert jnp.allclose(out, ref, atol=1e-5, rtol=1e-5), "mismatch vs pure-JAX reference"

    print("KERNEL_OK")
</pallas_src>

<mosaic_0001>
module attributes {stable_mosaic.version = 11 : i64} {
  func.func @mlp_kernel(%arg0: i32, %arg1: memref<5x128xf32, #tpu.memory_space<vmem>>, %arg2: memref<32x5xf32, #tpu.memory_space<vmem>>, %arg3: memref<32x1xf32, #tpu.memory_space<vmem>>, %arg4: memref<32x32xf32, #tpu.memory_space<vmem>>, %arg5: memref<32x1xf32, #tpu.memory_space<vmem>>, %arg6: memref<32x32xf32, #tpu.memory_space<vmem>>, %arg7: memref<32x1xf32, #tpu.memory_space<vmem>>, %arg8: memref<1x32xf32, #tpu.memory_space<vmem>>, %arg9: memref<1x1xf32, #tpu.memory_space<vmem>>, %arg10: memref<1x128xf32, #tpu.memory_space<vmem>>) attributes {dimension_semantics = [#tpu.dimension_semantics<parallel>], iteration_bounds = array<i64: 1>, scalar_prefetch = 0 : i64, scratch_operands = 0 : i64, tpu.core_type = #tpu.core_type<tc>, window_params = [{transform_indices = @transform_0, window_bounds = array<i64: 5, 128>}, {pipeline_mode = #tpu.pipeline_mode<synchronous>, transform_indices = @transform_1, window_bounds = array<i64: 32, 5>}, {pipeline_mode = #tpu.pipeline_mode<synchronous>, transform_indices = @transform_2, window_bounds = array<i64: 32, 1>}, {pipeline_mode = #tpu.pipeline_mode<synchronous>, transform_indices = @transform_3, window_bounds = array<i64: 32, 32>}, {pipeline_mode = #tpu.pipeline_mode<synchronous>, transform_indices = @transform_4, window_bounds = array<i64: 32, 1>}, {pipeline_mode = #tpu.pipeline_mode<synchronous>, transform_indices = @transform_5, window_bounds = array<i64: 32, 32>}, {pipeline_mode = #tpu.pipeline_mode<synchronous>, transform_indices = @transform_6, window_bounds = array<i64: 32, 1>}, {pipeline_mode = #tpu.pipeline_mode<synchronous>, transform_indices = @transform_7, window_bounds = array<i64: 1, 32>}, {pipeline_mode = #tpu.pipeline_mode<synchronous>, transform_indices = @transform_8, window_bounds = array<i64: 1, 1>}, {transform_indices = @transform_9, window_bounds = array<i64: 1, 128>}]} {
    %c0 = arith.constant 0 : index
    %c0_0 = arith.constant 0 : index
    %0 = vector.load %arg2[%c0, %c0_0] : memref<32x5xf32, #tpu.memory_space<vmem>>, vector<32x5xf32>
    %c0_1 = arith.constant 0 : index
    %c0_2 = arith.constant 0 : index
    %1 = vector.load %arg1[%c0_1, %c0_2] : memref<5x128xf32, #tpu.memory_space<vmem>>, vector<5x128xf32>
    %cst = arith.constant dense<0.000000e+00> : vector<32x128xf32>
    %2 = tpu.matmul %0, %1, %cst {dimension_numbers = #tpu.dot_dimension_numbers<[1], [0], [0], [1], [0, 0, 1, 1], [], []>} : vector<32x5xf32>, vector<5x128xf32>, vector<32x128xf32> -> vector<32x128xf32>
    %c0_3 = arith.constant 0 : index
    %c0_4 = arith.constant 0 : index
    %3 = vector.load %arg3[%c0_3, %c0_4] : memref<32x1xf32, #tpu.memory_space<vmem>>, vector<32x1xf32>
    %4 = vector.broadcast %3 : vector<32x1xf32> to vector<32x128xf32>
    %5 = arith.addf %2, %4 : vector<32x128xf32>
    %cst_5 = arith.constant 0.000000e+00 : f32
    %6 = vector.broadcast %cst_5 : f32 to vector<32x128xf32>
    %7 = arith.maximumf %5, %6 : vector<32x128xf32>
    %c0_6 = arith.constant 0 : index
    %c0_7 = arith.constant 0 : index
    %8 = vector.load %arg4[%c0_6, %c0_7] : memref<32x32xf32, #tpu.memory_space<vmem>>, vector<32x32xf32>
    %cst_8 = arith.constant dense<0.000000e+00> : vector<32x128xf32>
    %9 = tpu.matmul %8, %7, %cst_8 {dimension_numbers = #tpu.dot_dimension_numbers<[1], [0], [0], [1], [0, 0, 1, 1], [], []>} : vector<32x32xf32>, vector<32x128xf32>, vector<32x128xf32> -> vector<32x128xf32>
    %c0_9 = arith.constant 0 : index
    %c0_10 = arith.constant 0 : index
    %10 = vector.load %arg5[%c0_9, %c0_10] : memref<32x1xf32, #tpu.memory_space<vmem>>, vector<32x1xf32>
    %11 = vector.broadcast %10 : vector<32x1xf32> to vector<32x128xf32>
    %12 = arith.addf %9, %11 : vector<32x128xf32>
    %cst_11 = arith.constant 0.000000e+00 : f32
    %13 = vector.broadcast %cst_11 : f32 to vector<32x128xf32>
    %14 = arith.maximumf %12, %13 : vector<32x128xf32>
    %c0_12 = arith.constant 0 : index
    %c0_13 = arith.constant 0 : index
    %15 = vector.load %arg6[%c0_12, %c0_13] : memref<32x32xf32, #tpu.memory_space<vmem>>, vector<32x32xf32>
    %cst_14 = arith.constant dense<0.000000e+00> : vector<32x128xf32>
    %16 = tpu.matmul %15, %14, %cst_14 {dimension_numbers = #tpu.dot_dimension_numbers<[1], [0], [0], [1], [0, 0, 1, 1], [], []>} : vector<32x32xf32>, vector<32x128xf32>, vector<32x128xf32> -> vector<32x128xf32>
    %c0_15 = arith.constant 0 : index
    %c0_16 = arith.constant 0 : index
    %17 = vector.load %arg7[%c0_15, %c0_16] : memref<32x1xf32, #tpu.memory_space<vmem>>, vector<32x1xf32>
    %18 = vector.broadcast %17 : vector<32x1xf32> to vector<32x128xf32>
    %19 = arith.addf %16, %18 : vector<32x128xf32>
    %cst_17 = arith.constant 0.000000e+00 : f32
    %20 = vector.broadcast %cst_17 : f32 to vector<32x128xf32>
    %21 = arith.maximumf %19, %20 : vector<32x128xf32>
    %c0_18 = arith.constant 0 : index
    %c0_19 = arith.constant 0 : index
    %22 = vector.load %arg8[%c0_18, %c0_19] : memref<1x32xf32, #tpu.memory_space<vmem>>, vector<1x32xf32>
    %cst_20 = arith.constant dense<0.000000e+00> : vector<1x128xf32>
    %23 = tpu.matmul %22, %21, %cst_20 {dimension_numbers = #tpu.dot_dimension_numbers<[1], [0], [0], [1], [0, 0, 1, 1], [], []>} : vector<1x32xf32>, vector<32x128xf32>, vector<1x128xf32> -> vector<1x128xf32>
    %c0_21 = arith.constant 0 : index
    %c0_22 = arith.constant 0 : index
    %24 = vector.load %arg9[%c0_21, %c0_22] : memref<1x1xf32, #tpu.memory_space<vmem>>, vector<1x1xf32>
    %25 = vector.broadcast %24 : vector<1x1xf32> to vector<1x128xf32>
    %26 = arith.addf %23, %25 : vector<1x128xf32>
    %c0_23 = arith.constant 0 : index
    %c0_24 = arith.constant 0 : index
    %27 = vector.load %arg10[%c0_23, %c0_24] : memref<1x128xf32, #tpu.memory_space<vmem>>, vector<1x128xf32>
    tpu.vector_store %arg10[%c0_23, %c0_24], %26 {strides = array<i32>} : memref<1x128xf32, #tpu.memory_space<vmem>>, vector<1x128xf32>,
    return
  }
  func.func @transform_0(%arg0: i32) -> (i32, i32) {
    %c0_i32 = arith.constant 0 : i32
    %c0_i32_0 = arith.constant 0 : i32
    return %c0_i32, %arg0 : i32, i32
  }
  func.func @transform_1(%arg0: i32) -> (i32, i32) {
    %c0_i32 = arith.constant 0 : i32
    %c0_i32_0 = arith.constant 0 : i32
    %c0_i32_1 = arith.constant 0 : i32
    return %c0_i32, %c0_i32_0 : i32, i32
  }
  func.func @transform_2(%arg0: i32) -> (i32, i32) {
    %c0_i32 = arith.constant 0 : i32
    %c0_i32_0 = arith.constant 0 : i32
    %c0_i32_1 = arith.constant 0 : i32
    return %c0_i32, %c0_i32_0 : i32, i32
  }
  func.func @transform_3(%arg0: i32) -> (i32, i32) {
    %c0_i32 = arith.constant 0 : i32
    %c0_i32_0 = arith.constant 0 : i32
    %c0_i32_1 = arith.constant 0 : i32
    return %c0_i32, %c0_i32_0 : i32, i32
  }
  func.func @transform_4(%arg0: i32) -> (i32, i32) {
    %c0_i32 = arith.constant 0 : i32
    %c0_i32_0 = arith.constant 0 : i32
    %c0_i32_1 = arith.constant 0 : i32
    return %c0_i32, %c0_i32_0 : i32, i32
  }
  func.func @transform_5(%arg0: i32) -> (i32, i32) {
    %c0_i32 = arith.constant 0 : i32
    %c0_i32_0 = arith.constant 0 : i32
    %c0_i32_1 = arith.constant 0 : i32
    return %c0_i32, %c0_i32_0 : i32, i32
  }
  func.func @transform_6(%arg0: i32) -> (i32, i32) {
    %c0_i32 = arith.constant 0 : i32
    %c0_i32_0 = arith.constant 0 : i32
    %c0_i32_1 = arith.constant 0 : i32
    return %c0_i32, %c0_i32_0 : i32, i32
  }
  func.func @transform_7(%arg0: i32) -> (i32, i32) {
    %c0_i32 = arith.constant 0 : i32
    %c0_i32_0 = arith.constant 0 : i32
    %c0_i32_1 = arith.constant 0 : i32
    return %c0_i32, %c0_i32_0 : i32, i32
  }
  func.func @transform_8(%arg0: i32) -> (i32, i32) {
    %c0_i32 = arith.constant 0 : i32
    %c0_i32_0 = arith.constant 0 : i32
    %c0_i32_1 = arith.constant 0 : i32
    return %c0_i32, %c0_i32_0 : i32, i32
  }
  func.func @transform_9(%arg0: i32) -> (i32, i32) {
    %c0_i32 = arith.constant 0 : i32
    %c0_i32_0 = arith.constant 0 : i32
    return %c0_i32, %arg0 : i32, i32
  }
}

</mosaic_0001>

<bundles_post_ra>
// kernel: tpu_custom_call.1
= control target key start
LH: loop header
LB: loop body
LE: loop exit
PB: predicated region body
PF: predicated region fallthrough
CT: control target
= control target key end

     0   :  { %s794_s0 = inlined_call_operand.vmem [shape: f32[5,128], index: 0, kind: input, shape index: {}]   ;;  %s795_s1 = inlined_call_operand.vmem [shape: f32[32,5], index: 1, kind: input, shape index: {}]   ;;  %s796_s2 = inlined_call_operand.vmem [shape: f32[32,1], index: 2, kind: input, shape index: {}]   ;;  %s797_s3 = inlined_call_operand.vmem [shape: f32[32,32], index: 3, kind: input, shape index: {}]   ;;  %s798_s4 = inlined_call_operand.vmem [shape: f32[32,1], index: 4, kind: input, shape index: {}]   ;;  %s799_s5 = inlined_call_operand.vmem [shape: f32[32,32], index: 5, kind: input, shape index: {}]   ;;  %s800_s6 = inlined_call_operand.vmem [shape: f32[32,1], index: 6, kind: input, shape index: {}]   ;;  %s801_s7 = inlined_call_operand.vmem [shape: f32[1,32], index: 7, kind: input, shape index: {}]   ;;  %s802_s8 = inlined_call_operand.<no memory space> [shape: f32[1,1], index: 8, kind: input, shape index: {}]   ;;  %s803_s9 = inlined_call_operand.hbm [shape: f32[1,128], index: 9, kind: output, shape index: {}]  }
   0x1   :  { %v14_v0 = vstv %s802_s8 }
   0x2   :  { %15 = vst [vmem:[#allocation2] sm:$0x1] %v14_v0 }
   0x3   :  { %v39_v1 = vld [vmem:[%s794_s0] sm:$0x1f]  ;;  %vm77_vm0 = vcmask 1044480   ;;  %vm64_vm1 = vcmask 39936   ;;  %v36_v3 = vld [vmem:[%s795_s1 + $0x8] sm:$0xff]  ;;  %v37_v4 = vld [vmem:[%s795_s1 + $0x10] sm:$0xff] }
   0x4   :  { %v35_v2 = vld [vmem:[%s795_s1] sm:$0xff]  ;;  %568 = vmatprep.subr.msk.mxu0 %vm77_vm0, %v39_v1  ;;  %v43_v5 = vld [vmem:[%s796_s2 + $0x18] sm:$0xff]  ;;  %v643_v6 = vmov 0   ;;  %v41_v7 = vld [vmem:[%s796_s2 + $0x8] sm:$0xff] }
   0x5   :  { %570 = vmatprep.mubr.msk.f32.mxu0 %vm64_vm1, %v35_v2  ;;  %569 = vmatpush3.msk.msra.mxu0 %vm77_vm0, %v39_v1  ;;  %v38_v8 = vld [vmem:[%s795_s1 + $0x18] sm:$0xff]  ;;  %v42_v9 = vld [vmem:[%s796_s2 + $0x10] sm:$0xff]  ;;  %v40_v10 = vld [vmem:[%s796_s2] sm:$0xff] }
   0x6   :  { %619 = vset.pattern.permute.xlu0 %v643_v6  ;;  %571 = vmatmul.mubr.msk.f32.vlgmr.msra.gmra.mxu0 %vm64_vm1, %v36_v3 }
   0x7   :  { %61 = vperm.xlu0 %619, %v43_v5   ;;  %573 = vmatprep.mubr.msk.f32.mxu0 %vm64_vm1, %v37_v4 }
   0x8   :  { %620 = vset.pattern.permute.xlu1 %v643_v6 }
   0x9   :  { %51 = vperm.xlu1 %620, %v41_v7  }
   0xa   :  { %16 = vsyncpa [#allocation4], 0  ;;  %574 = vmatmul.mubr.msk.f32.gmra.mxu0 %vm64_vm1, %v38_v8  ;;  %v177_v11 = vld [vmem:[%s798_s4 + $0x18] sm:$0xff]  ;;  %v176_v12 = vld [vmem:[%s798_s4 + $0x10] sm:$0xff]  ;;  %vm198_vm2 = vcmask 261120   ;;  %v644_v60 = vmov 0.0  }
   0xb   :  { %56 = vperm.xlu0 %619, %v42_v9   ;;  %v175_v13 = vld [vmem:[%s798_s4 + $0x8] sm:$0xff]  ;;  %v174_v14 = vld [vmem:[%s798_s4] sm:$0xff]  ;;  %v307_v15 = vld [vmem:[%s800_s6 + $0x18] sm:$0xff]  ;;  %vm645_vm3 = vmmov 0   ;;  %s646_s10 = smov [#allocation3]  }
   0xc   :  { %v306_v16 = vld [vmem:[%s800_s6 + $0x10] sm:$0xff]  ;;  %v305_v17 = vld [vmem:[%s800_s6 + $0x8] sm:$0xff]  ;;  %v304_v18 = vld [vmem:[%s800_s6] sm:$0xff]  ;;  %s520_s2 = sshll.u32 %s646_s10, 4  ;;  %s521_s2 = int_to_ptr.vmem [resolvable:$true] %s520_s2 }
   0xd   :  { %46 = vperm.xlu1 %620, %v40_v10   ;;  %v430_v19 = vld [vmem:[#allocation2] sm:$0x1]  ;;  %v171_v37 = vld [vmem:[%s797_s3 + $0x8] sm:$0xff]  ;;  %v172_v38 = vld [vmem:[%s797_s3 + $0x10] sm:$0xff]  ;;  %s621_s11 = scalar_lea.vmem %s521_s2, 16  ;;  %s625_s12 = scalar_lea.vmem %s521_s2, 32 }
   0xe   :  { %v170_v20 = vld [vmem:[%s797_s3] sm:$0xff]  ;;  %v173_v39 = vld [vmem:[%s797_s3 + $0x18] sm:$0xff]  ;;  %v301_v57 = vld [vmem:[%s799_s5 + $0x8] sm:$0xff]  ;;  %p622_p0 = scmp.ne.s32.totalorder %s521_s2, %s621_s11  ;;  %p626_p1 = scmp.lt.s32.totalorder %s521_s2, %s521_s2 }
   0xf   :  { %195 = vperm.xlu0 %619, %v177_v11   ;;  %584 = vmatprep.mubr.msk.f32.mxu1 %vm198_vm2, %v170_v20  ;;  %v300_v40 = vld [vmem:[%s799_s5] sm:$0xff]  ;;  %v302_v58 = vld [vmem:[%s799_s5 + $0x10] sm:$0xff]  ;;  %v303_v59 = vld [vmem:[%s799_s5 + $0x18] sm:$0xff]  ;;  %p627_p2 = scmp.lt.s32.totalorder %s625_s12, %s621_s11 }
  0x10   :  { %598 = vmatprep.mubr.msk.f32.mxu0 %vm198_vm2, %v300_v40 }
  0x11   :  { %190 = vperm.xlu1 %620, %v176_v12   ;;  %p628_p3 = por %p627_p2, %p626_p1 }
  0x13   :  { %185 = vperm.xlu0 %619, %v175_v13   ;;  %v429_v13 = vld [vmem:[%s801_s7] sm:$0x1]  ;;  %p629_p4 = pnand %p628_p3, %p622_p0 }
  0x15   :  { %180 = vperm.xlu1 %620, %v174_v14   ;;  %v436_v14 = vlaneseq }
  0x17   :  { %325 = vperm.xlu0 %619, %v307_v15   ;;  %v437_v15 = vshrl.u32 %v436_v14, 7 }
  0x19   :  { %320 = vperm.xlu1 %620, %v306_v16   ;;  %v438_v16 = vsub.s32 0, %v437_v15 }
  0x1b   :  { %315 = vperm.xlu0 %619, %v305_v17  }
  0x1d   :  { %310 = vperm.xlu1 %620, %v304_v18  }
  0x1f   :  { %433 = vperm.xlu0 %619, %v430_v19  }
  0x82   :  { %v62_v21 = vpop.permute.xlu0 %61 }
  0x84   :  { %v52_v23 = vpop.permute.xlu1 %51 }
  0x86   :  { %v57_v27 = vpop.permute.xlu0 %56 }
  0x88   :  { %v47_v32 = vpop.permute.xlu1 %46 }
  0x8a   :  { %v196_v41 = vpop.permute.xlu0 %195 }
  0x8c   :  { %v191_v43 = vpop.permute.xlu1 %190 }
  0x8e   :  { %v186_v47 = vpop.permute.xlu0 %185 }
  0x90   :  { %v181_v52 = vpop.permute.xlu1 %180 }
  0x92   :  { %v326_v61 = vpop.permute.xlu0 %325 }
  0x94   :  { %v321_v63 = vpop.permute.xlu1 %320 }
  0x96   :  { %v316_v3 = vpop.permute.xlu0 %315 }
  0x98   :  { %v311_v8 = vpop.permute.xlu1 %310 }
  0x9a   :  { %v434_v17 = vpop.permute.xlu0 %433 }
  0x9b   :  { %v439_v18 = vrot.slane %v434_v17, %v438_v16 }
  0xc6   :  { %v572_v22 = vpop.f32.mrf.mxu0 }
  0xc7   :  { %v153_v29 = vadd.f32 %v572_v22, %v52_v23 }
  0xc8   :  { %v147_v24 = vpop.f32.mrf.mxu0 }
  0xc9   :  { %v148_v33 = vadd.f32 %v147_v24, %v47_v32  ;;  %v167_v35 = vmax.f32 %v153_v29, 0.0 }
  0xca   :  { %v575_v25 = vpop.f32.mrf.mxu0 }
  0xcb   :  { %v163_v26 = vadd.f32 %v575_v25, %v62_v21  ;;  %v166_v36 = vmax.f32 %v148_v33, 0.0 }
  0xcc   :  { %v157_v28 = vpop.f32.mrf.mxu0 }
  0xcd   :  { %v169_v30 = vmax.f32 %v163_v26, 0.0  ;;  %v158_v31 = vadd.f32 %v157_v28, %v57_v27 }
  0xcf   :  { %v168_v34 = vmax.f32 %v158_v31, 0.0  ;;  %576 = vmatprep.subr.mxu1 %v169_v30 }
  0xd0   :  { %577 = vmatpush3.msra.mxu1 %v169_v30 }
  0xd1   :  { %578 = vmatprep.subr.mxu1 %v168_v34 }
  0xd2   :  { %579 = vmatpush3.msra.mxu1 %v168_v34 }
  0xd3   :  { %580 = vmatprep.subr.mxu1 %v167_v35 }
  0xd4   :  { %581 = vmatpush3.msra.mxu1 %v167_v35 }
  0xd5   :  { %582 = vmatprep.subr.mxu1 %v166_v36 }
  0xd6   :  { %583 = vmatpush3.msra.mxu1 %v166_v36 }
  0xd7   :  { %585 = vmatmul.mubr.msk.f32.vlgmr.msra.gmra.mxu1 %vm198_vm2, %v171_v37  ;;  %604 = vmatprep.subr.mxu1 %v644_v60 }
  0xd8   :  { %587 = vmatprep.mubr.msk.f32.mxu1 %vm198_vm2, %v172_v38 }
  0xdb   :  { %588 = vmatmul.mubr.msk.f32.gmra.mxu1 %vm198_vm2, %v173_v39 }
  0xdc   :  { %612 = vmatprep.mubr.msk.f32.mxu1 %vm645_vm3, %v644_v60 }
 0x197   :  { %v586_v42 = vpop.f32.mrf.mxu1 }
 0x198   :  { %v283_v49 = vadd.f32 %v586_v42, %v186_v47 }
 0x199   :  { %v277_v44 = vpop.f32.mrf.mxu1 }
 0x19a   :  { %v278_v53 = vadd.f32 %v277_v44, %v181_v52  ;;  %v297_v55 = vmax.f32 %v283_v49, 0.0 }
 0x19b   :  { %v589_v45 = vpop.f32.mrf.mxu1 }
 0x19c   :  { %v293_v46 = vadd.f32 %v589_v45, %v196_v41  ;;  %v296_v56 = vmax.f32 %v278_v53, 0.0 }
 0x19d   :  { %v287_v48 = vpop.f32.mrf.mxu1 }
 0x19e   :  { %v299_v50 = vmax.f32 %v293_v46, 0.0  ;;  %v288_v51 = vadd.f32 %v287_v48, %v191_v43 }
 0x1a0   :  { %v298_v54 = vmax.f32 %v288_v51, 0.0  ;;  %590 = vmatprep.subr.mxu0 %v299_v50 }
 0x1a1   :  { %591 = vmatpush3.msra.mxu0 %v299_v50 }
 0x1a2   :  { %592 = vmatprep.subr.mxu0 %v298_v54 }
 0x1a3   :  { %593 = vmatpush3.msra.mxu0 %v298_v54 }
 0x1a4   :  { %594 = vmatprep.subr.mxu0 %v297_v55 }
 0x1a5   :  { %595 = vmatpush3.msra.mxu0 %v297_v55 }
 0x1a6   :  { %596 = vmatprep.subr.mxu0 %v296_v56 }
 0x1a7   :  { %597 = vmatpush3.msra.mxu0 %v296_v56 }
 0x1a8   :  { %599 = vmatmul.mubr.msk.f32.vlgmr.msra.gmra.mxu0 %vm198_vm2, %v301_v57 }
 0x1a9   :  { %601 = vmatprep.mubr.msk.f32.mxu0 %vm198_vm2, %v302_v58 }
 0x1ac   :  { %602 = vmatmul.mubr.msk.f32.gmra.mxu0 %vm198_vm2, %v303_v59 }
 0x268   :  { %v600_v62 = vpop.f32.mrf.mxu0 }
 0x269   :  { %v412_v5 = vadd.f32 %v600_v62, %v316_v3 }
 0x26a   :  { %v406_v0 = vpop.f32.mrf.mxu0 }
 0x26b   :  { %v407_v9 = vadd.f32 %v406_v0, %v311_v8  ;;  %v426_v11 = vmax.f32 %v412_v5, 0.0 }
 0x26c   :  { %v603_v1 = vpop.f32.mrf.mxu0 }
 0x26d   :  { %v422_v2 = vadd.f32 %v603_v1, %v326_v61  ;;  %v425_v12 = vmax.f32 %v407_v9, 0.0 }
 0x26e   :  { %v416_v4 = vpop.f32.mrf.mxu0 }
 0x26f   :  { %v428_v6 = vmax.f32 %v422_v2, 0.0  ;;  %v417_v7 = vadd.f32 %v416_v4, %v321_v63 }
 0x271   :  { %v427_v10 = vmax.f32 %v417_v7, 0.0  ;;  %605 = vmatpush3.msra.mxu1 %v428_v6 }
 0x272   :  { %606 = vmatprep.subr.mxu1 %v644_v60 }
 0x273   :  { %607 = vmatpush3.msra.mxu1 %v427_v10 }
 0x274   :  { %608 = vmatprep.subr.mxu1 %v644_v60 }
 0x275   :  { %609 = vmatpush3.msra.mxu1 %v426_v11 }
 0x276   :  { %610 = vmatprep.subr.mxu1 %v644_v60 }
 0x277   :  { %611 = vmatpush3.msra.mxu1 %v425_v12 }
 0x278   :  { %613 = vmatmul.mubr.msk.f32.vlgmr.msra.gmra.mxu1 %vm198_vm2, %v429_v13 }
 0x338   :  { %v509_v19 = vpop.f32.mrf.mxu1 }
 0x339   :  { %v510_v20 = vadd.f32 %v509_v19, %v439_v18 }
 0x33a   :  { %v614_v21 = vpop.f32.mrf.mxu1 }
 0x33b   :  { %513 = vst [vmem:[#allocation3] sm:$0x1] %v510_v20 }
 0x33c   :  { %632 = shalt.err (!%p629_p4)
}
 0x33d   :  { %523 = dma.vmem_to_hbm [thread:$0]  %s521_s2, 16, %s803_s9, [#allocation4]  }
 0x33e   :  { %641 = dma.done.wait [#allocation4], 16  }
 0x33f   :  { %642 = vsyncadd [#allocation4], 4294967280 }
 0x340   :  { %527 = vsyncpa [#allocation4], 1 }

</bundles_post_ra>
